<compile_context>
chip_gen: v7x
topology: tpu7x:2x2x1
jax: 0.10.0
libtpu: 0.0.40
codegen_flags: <defaults>
</compile_context>

<pallas_src>
import jax
import jax.numpy as jnp
from jax.experimental import pallas as pl
from jax.experimental.pallas import tpu as pltpu


def v_network_kernel(x_ref, w1_ref, b1_ref, w2_ref, b2_ref, w3_ref, b3_ref, o_ref):
    """One batch tile, batch-on-lanes layout.

    x_ref:  (S,  TB) bf16     w1_ref: (H1, S)  bf16   b1_ref: (H1, 1) f32
    w2_ref: (H2, H1) bf16     b2_ref: (H2, 1)  f32
    w3_ref: (H2, 1)  f32      b3_ref: (1, 1)   f32
    o_ref:  (1, 1, TB) f32  -- lane-dense V values for this tile.
    """
    xt = x_ref[...]                                                      # (S, TB)
    h1 = jnp.dot(w1_ref[...], xt, preferred_element_type=jnp.float32) + b1_ref[...]
    h1 = jnp.maximum(h1, 0.0).astype(jnp.bfloat16)                       # (H1, TB)
    h2 = jnp.dot(w2_ref[...], h1, preferred_element_type=jnp.float32) + b2_ref[...]
    h2 = jnp.maximum(h2, 0.0)                                            # (H2, TB) f32
    # Final 1-wide layer on the VPU/XLU: no padded MXU tile, no padded output.
    v = jnp.sum(h2 * w3_ref[...], axis=0, keepdims=True) + b3_ref[...]   # (1, TB)
    o_ref[0] = v


def _round_up(n, m):
    return ((n + m - 1) // m) * m


def _choose_tile(batch, desired):
    """Lane-multiple batch tile, clamped for small B, split so v7x gets >=2 steps."""
    rows = _round_up(max(batch, 1), 128)
    tb = max(128, min(desired, rows))
    if rows > 128 and pl.cdiv(rows, tb) < 2:
        tb = _round_up(rows // 2, 128)
    return tb


def _prepare_kernel_params(params):
    """f32 params -> kernel dtypes: bf16 matmul weights, f32 biases / w3 column."""
    w1, b1, w2, b2, w3, b3 = params
    return (w1.astype(jnp.bfloat16), b1.astype(jnp.float32),
            w2.astype(jnp.bfloat16), b2.astype(jnp.float32),
            w3.astype(jnp.float32), b3.astype(jnp.float32))


def v_network_forward(state, params, *, tile_b=1024):
    """Batch-tiled forward.  Pads B to a tile multiple, runs the 1-D grid, and
    reshapes the lane-packed (n_tiles, 1, tile_b) output back to (B, 1)."""
    w1, b1, w2, b2, w3, b3 = _prepare_kernel_params(params)
    B, S = state.shape
    H1 = w1.shape[0]
    H2 = w2.shape[0]

    tb = _choose_tile(B, tile_b)
    n_tiles = pl.cdiv(B, tb)
    B_pad = n_tiles * tb

    # Batch-on-lanes: (B, S) -> (S, B_pad) bf16.  Padded columns compute
    # relu(bias) garbage that is sliced off below.
    xt = state.astype(jnp.bfloat16).T
    if B_pad != B:
        xt = jnp.pad(xt, ((0, 0), (0, B_pad - B)))

    resident = lambda shape: pl.BlockSpec(shape, lambda i: (0, 0))

    out = pl.pallas_call(
        v_network_kernel,
        out_shape=jax.ShapeDtypeStruct((n_tiles, 1, tb), jnp.float32),
        grid_spec=pltpu.PrefetchScalarGridSpec(
            num_scalar_prefetch=0,
            grid=(n_tiles,),
            in_specs=[
                pl.BlockSpec((S, tb), lambda i: (0, i)),   # x^T: streamed per tile
                resident((H1, S)), resident((H1, 1)),      # fc1 (VMEM-resident)
                resident((H2, H1)), resident((H2, 1)),     # fc2
                resident((H2, 1)), resident((1, 1)),       # output layer (unpadded)
            ],
            out_specs=pl.BlockSpec((1, 1, tb), lambda i: (i, 0, 0)),
        ),
        compiler_params=pltpu.CompilerParams(
            # Shard batch tiles across both TensorCores on v7x; no-op on v5e/v6e.
            dimension_semantics=("parallel",),
            # NOTE: resident weights are <10 KiB at these sizes.  If H1/H2 grow,
            # set vmem_limit_bytes to weights + double-buffered x/out tiles
            # (v5e scoped default is 16 MiB; v7x physical VMEM is 64 MiB).
        ),
    )(xt, w1, b1, w2, b2, w3, b3)

    # (n_tiles, 1, tb) -> (B_pad, 1) preserves batch order, then drop padding.
    return out.reshape(B_pad, 1)[:B]


def init_params(key, num_states, hidden_units_1, hidden_units_2):
    """Deterministic init mimicking torch.nn.Linear's U(-1/sqrt(fan_in), +).
    Weights stored (out, in) -- torch layout, which is exactly what the
    batch-on-lanes kernel wants; biases / w3 stored as column vectors."""
    ks = jax.random.split(key, 6)

    def linear(kw, kb, fan_in, fan_out):
        bound = 1.0 / jnp.sqrt(jnp.float32(fan_in))
        w = jax.random.uniform(kw, (fan_out, fan_in), jnp.float32, -bound, bound)
        b = jax.random.uniform(kb, (fan_out, 1), jnp.float32, -bound, bound)
        return w, b

    w1, b1 = linear(ks[0], ks[1], num_states, hidden_units_1)
    w2, b2 = linear(ks[2], ks[3], hidden_units_1, hidden_units_2)
    w3_row, b3 = linear(ks[4], ks[5], hidden_units_2, 1)   # (1, H2), (1, 1)
    return (w1, b1, w2, b2, w3_row.T, b3)                  # w3 stored (H2, 1)


def v_network_ref(state, params):
    """Pure-JAX reference mirroring the kernel numerics (bf16 inputs/weights for
    the two MXU layers, f32 accumulate, final layer fully f32)."""
    w1, b1, w2, b2, w3, b3 = params
    bf = lambda a: a.astype(jnp.bfloat16).astype(jnp.float32)
    x = bf(state)
    h1 = bf(jnp.maximum(x @ bf(w1).T + b1.T, 0.0))
    h2 = jnp.maximum(h1 @ bf(w2).T + b2.T, 0.0)
    return h2 @ w3 + b3.T


if __name__ == "__main__":
    key = jax.random.PRNGKey(0)
    k_state, k_params = jax.random.split(key)

    # Small shapes consistent with the module: batch=2, num_states=4,
    # hidden_units_1=32, hidden_units_2=32.
    B, num_states, h1, h2 = 2, 4, 32, 32

    state = jax.random.normal(k_state, (B, num_states), jnp.float32)
    params = init_params(k_params, num_states, h1, h2)

    out = jax.block_until_ready(v_network_forward(state, params))
    ref = v_network_ref(state, params)

    assert out.shape == (B, 1), out.shape
    assert jnp.allclose(out, ref, atol=1e-4, rtol=1e-4), (out, ref)

    print("KERNEL_OK")
</pallas_src>

<mosaic_0001>
module attributes {stable_mosaic.version = 11 : i64} {
  func.func @v_network_kernel(%arg0: i32, %arg1: memref<4x128xbf16, #tpu.memory_space<vmem>>, %arg2: memref<32x4xbf16, #tpu.memory_space<vmem>>, %arg3: memref<32x1xf32, #tpu.memory_space<vmem>>, %arg4: memref<32x32xbf16, #tpu.memory_space<vmem>>, %arg5: memref<32x1xf32, #tpu.memory_space<vmem>>, %arg6: memref<32x1xf32, #tpu.memory_space<vmem>>, %arg7: memref<1x1xf32, #tpu.memory_space<vmem>>, %arg8: memref<1x1x128xf32, #tpu.memory_space<vmem>>) attributes {dimension_semantics = [#tpu.dimension_semantics<parallel>], iteration_bounds = array<i64: 1>, scalar_prefetch = 0 : i64, scratch_operands = 0 : i64, tpu.core_type = #tpu.core_type<tc>, window_params = [{transform_indices = @transform_0, window_bounds = array<i64: 4, 128>}, {pipeline_mode = #tpu.pipeline_mode<synchronous>, transform_indices = @transform_1, window_bounds = array<i64: 32, 4>}, {pipeline_mode = #tpu.pipeline_mode<synchronous>, transform_indices = @transform_2, window_bounds = array<i64: 32, 1>}, {pipeline_mode = #tpu.pipeline_mode<synchronous>, transform_indices = @transform_3, window_bounds = array<i64: 32, 32>}, {pipeline_mode = #tpu.pipeline_mode<synchronous>, transform_indices = @transform_4, window_bounds = array<i64: 32, 1>}, {pipeline_mode = #tpu.pipeline_mode<synchronous>, transform_indices = @transform_5, window_bounds = array<i64: 32, 1>}, {pipeline_mode = #tpu.pipeline_mode<synchronous>, transform_indices = @transform_6, window_bounds = array<i64: 1, 1>}, {transform_indices = @transform_7, window_bounds = array<i64: 1, 1, 128>}]} {
    %c0 = arith.constant 0 : index
    %c0_0 = arith.constant 0 : index
    %0 = vector.load %arg1[%c0, %c0_0] : memref<4x128xbf16, #tpu.memory_space<vmem>>, vector<4x128xbf16>
    %c0_1 = arith.constant 0 : index
    %c0_2 = arith.constant 0 : index
    %1 = vector.load %arg2[%c0_1, %c0_2] : memref<32x4xbf16, #tpu.memory_space<vmem>>, vector<32x4xbf16>
    %cst = arith.constant dense<0.000000e+00> : vector<32x128xf32>
    %2 = tpu.matmul %1, %0, %cst {dimension_numbers = #tpu.dot_dimension_numbers<[1], [0], [0], [1], [0, 0, 1, 1], [], []>} : vector<32x4xbf16>, vector<4x128xbf16>, vector<32x128xf32> -> vector<32x128xf32>
    %c0_3 = arith.constant 0 : index
    %c0_4 = arith.constant 0 : index
    %3 = vector.load %arg3[%c0_3, %c0_4] : memref<32x1xf32, #tpu.memory_space<vmem>>, vector<32x1xf32>
    %4 = vector.broadcast %3 : vector<32x1xf32> to vector<32x128xf32>
    %5 = arith.addf %2, %4 : vector<32x128xf32>
    %cst_5 = arith.constant 0.000000e+00 : f32
    %6 = vector.broadcast %cst_5 : f32 to vector<32x128xf32>
    %7 = arith.maximumf %5, %6 : vector<32x128xf32>
    %8 = arith.truncf %7 : vector<32x128xf32> to vector<32x128xbf16>
    %c0_6 = arith.constant 0 : index
    %c0_7 = arith.constant 0 : index
    %9 = vector.load %arg4[%c0_6, %c0_7] : memref<32x32xbf16, #tpu.memory_space<vmem>>, vector<32x32xbf16>
    %cst_8 = arith.constant dense<0.000000e+00> : vector<32x128xf32>
    %10 = tpu.matmul %9, %8, %cst_8 {dimension_numbers = #tpu.dot_dimension_numbers<[1], [0], [0], [1], [0, 0, 1, 1], [], []>} : vector<32x32xbf16>, vector<32x128xbf16>, vector<32x128xf32> -> vector<32x128xf32>
    %c0_9 = arith.constant 0 : index
    %c0_10 = arith.constant 0 : index
    %11 = vector.load %arg5[%c0_9, %c0_10] : memref<32x1xf32, #tpu.memory_space<vmem>>, vector<32x1xf32>
    %12 = vector.broadcast %11 : vector<32x1xf32> to vector<32x128xf32>
    %13 = arith.addf %10, %12 : vector<32x128xf32>
    %cst_11 = arith.constant 0.000000e+00 : f32
    %14 = vector.broadcast %cst_11 : f32 to vector<32x128xf32>
    %15 = arith.maximumf %13, %14 : vector<32x128xf32>
    %c0_12 = arith.constant 0 : index
    %c0_13 = arith.constant 0 : index
    %16 = vector.load %arg6[%c0_12, %c0_13] : memref<32x1xf32, #tpu.memory_space<vmem>>, vector<32x1xf32>
    %17 = vector.broadcast %16 : vector<32x1xf32> to vector<32x128xf32>
    %18 = arith.mulf %15, %17 : vector<32x128xf32>
    %cst_14 = arith.constant dense<0.000000e+00> : vector<128xf32>
    %19 = vector.multi_reduction <add>, %18, %cst_14 [0] : vector<32x128xf32> to vector<128xf32>
    %20 = vector.shape_cast %19 : vector<128xf32> to vector<1x128xf32>
    %c0_15 = arith.constant 0 : index
    %c0_16 = arith.constant 0 : index
    %21 = vector.load %arg7[%c0_15, %c0_16] : memref<1x1xf32, #tpu.memory_space<vmem>>, vector<1x1xf32>
    %22 = vector.broadcast %21 : vector<1x1xf32> to vector<1x128xf32>
    %23 = arith.addf %20, %22 : vector<1x128xf32>
    %c0_17 = arith.constant 0 : index
    %c0_18 = arith.constant 0 : index
    %c0_19 = arith.constant 0 : index
    %24 = vector.load %arg8[%c0_17, %c0_18, %c0_19] : memref<1x1x128xf32, #tpu.memory_space<vmem>>, vector<1x1x128xf32>
    %25 = vector.shape_cast %24 : vector<1x1x128xf32> to vector<1x128xf32>
    %26 = vector.shape_cast %23 : vector<1x128xf32> to vector<1x1x128xf32>
    tpu.vector_store %arg8[%c0_17, %c0_18, %c0_19], %26 {strides = array<i32>} : memref<1x1x128xf32, #tpu.memory_space<vmem>>, vector<1x1x128xf32>,
    return
  }
  func.func @transform_0(%arg0: i32) -> (i32, i32) {
    %c0_i32 = arith.constant 0 : i32
    %c0_i32_0 = arith.constant 0 : i32
    return %c0_i32, %arg0 : i32, i32
  }
  func.func @transform_1(%arg0: i32) -> (i32, i32) {
    %c0_i32 = arith.constant 0 : i32
    %c0_i32_0 = arith.constant 0 : i32
    %c0_i32_1 = arith.constant 0 : i32
    return %c0_i32, %c0_i32_0 : i32, i32
  }
  func.func @transform_2(%arg0: i32) -> (i32, i32) {
    %c0_i32 = arith.constant 0 : i32
    %c0_i32_0 = arith.constant 0 : i32
    %c0_i32_1 = arith.constant 0 : i32
    return %c0_i32, %c0_i32_0 : i32, i32
  }
  func.func @transform_3(%arg0: i32) -> (i32, i32) {
    %c0_i32 = arith.constant 0 : i32
    %c0_i32_0 = arith.constant 0 : i32
    %c0_i32_1 = arith.constant 0 : i32
    return %c0_i32, %c0_i32_0 : i32, i32
  }
  func.func @transform_4(%arg0: i32) -> (i32, i32) {
    %c0_i32 = arith.constant 0 : i32
    %c0_i32_0 = arith.constant 0 : i32
    %c0_i32_1 = arith.constant 0 : i32
    return %c0_i32, %c0_i32_0 : i32, i32
  }
  func.func @transform_5(%arg0: i32) -> (i32, i32) {
    %c0_i32 = arith.constant 0 : i32
    %c0_i32_0 = arith.constant 0 : i32
    %c0_i32_1 = arith.constant 0 : i32
    return %c0_i32, %c0_i32_0 : i32, i32
  }
  func.func @transform_6(%arg0: i32) -> (i32, i32) {
    %c0_i32 = arith.constant 0 : i32
    %c0_i32_0 = arith.constant 0 : i32
    %c0_i32_1 = arith.constant 0 : i32
    return %c0_i32, %c0_i32_0 : i32, i32
  }
  func.func @transform_7(%arg0: i32) -> (i32, i32, i32) {
    %c0_i32 = arith.constant 0 : i32
    %c0_i32_0 = arith.constant 0 : i32
    %c0_i32_1 = arith.constant 0 : i32
    return %arg0, %c0_i32, %c0_i32_0 : i32, i32, i32
  }
}

</mosaic_0001>

<bundles_post_ra>
// kernel: tpu_custom_call.1
= control target key start
LH: loop header
LB: loop body
LE: loop exit
PB: predicated region body
PF: predicated region fallthrough
CT: control target
= control target key end

     0   :  { %s468_s0 = inlined_call_operand.vmem [shape: bf16[4,128], index: 0, kind: input, shape index: {}]   ;;  %s469_s1 = inlined_call_operand.vmem [shape: bf16[32,4], index: 1, kind: input, shape index: {}]   ;;  %s470_s2 = inlined_call_operand.vmem [shape: f32[32,1], index: 2, kind: input, shape index: {}]   ;;  %s471_s3 = inlined_call_operand.vmem [shape: bf16[32,32], index: 3, kind: input, shape index: {}]   ;;  %s472_s4 = inlined_call_operand.vmem [shape: f32[32,1], index: 4, kind: input, shape index: {}]   ;;  %s473_s5 = inlined_call_operand.vmem [shape: f32[32,1], index: 5, kind: input, shape index: {}]   ;;  %s474_s6 = inlined_call_operand.<no memory space> [shape: f32[1,1], index: 6, kind: input, shape index: {}]   ;;  %s475_s7 = inlined_call_operand.hbm [shape: f32[1,1,128], index: 7, kind: output, shape index: {}]  }
   0x1   :  { %v12_v0 = vstv %s474_s6 }
   0x2   :  { %13 = vst [vmem:[#allocation2] sm:$0x1] %v12_v0 }
   0x3   :  { %v30_v1 = vld [vmem:[%s468_s0] sm:$0x3]  ;;  %vm76_vm0 = vcmask 1041408   ;;  %vm69_vm1 = vcmask 31744   ;;  %v331_v4 = vld [vmem:[%s469_s1 + $0x8] sm:$0xff]   ;;  %v358_v6 = vmov 0  }
   0x4   :  { %v330_v2 = vld [vmem:[%s469_s1] sm:$0xff]   ;;  %325 = vmatprep.subr.msk.bf16.mxu0 %vm76_vm0, %v30_v1  ;;  %v78_v3 = vsel %vm76_vm0, %v30_v1, 0  ;;  %328 = vset.pattern.permute.xlu0 %v358_v6  ;;  %v37_v7 = vld [vmem:[%s470_s2 + $0x10] sm:$0xff]  ;;  %v36_v8 = vld [vmem:[%s470_s2 + $0x8] sm:$0xff] }
   0x5   :  { %312 = vmatpush3.bf16.msra.mxu0 %v78_v3  ;;  %313 = vmatprep.mubr.msk.bf16.mxu0 %vm69_vm1, %v330_v2  ;;  %v35_v5 = vld [vmem:[%s470_s2] sm:$0xff]  ;;  %v38_v9 = vld [vmem:[%s470_s2 + $0x18] sm:$0xff] }
   0x6   :  { %329 = vset.pattern.permute.xlu1 %v358_v6  ;;  %41 = vperm.xlu0 %328, %v35_v5  }
   0x7   :  { %51 = vperm.xlu1 %329, %v37_v7  }
   0x8   :  { %314 = vmatmul.mubr.msk.bf16.vlgmr.msra.gmra.mrb[0].mxu0 %vm69_vm1, %v331_v4 }
   0xa   :  { %46 = vperm.xlu0 %328, %v36_v8  }
   0xb   :  { %56 = vperm.xlu1 %329, %v38_v9  }
   0xc   :  { %14 = vsyncpa [#allocation4], 0  ;;  %v139_v10 = vld [vmem:[%s472_s4] sm:$0xff]  ;;  %v140_v11 = vld [vmem:[%s472_s4 + $0x8] sm:$0xff]  ;;  %vm173_vm2 = vcmask 261120   ;;  %v276_v1 = vlaneseq }
   0xd   :  { %v141_v12 = vld [vmem:[%s472_s4 + $0x10] sm:$0xff]  ;;  %v142_v13 = vld [vmem:[%s472_s4 + $0x18] sm:$0xff]  ;;  %v233_v14 = vld [vmem:[%s473_s5] sm:$0xff] }
   0xe   :  { %145 = vperm.xlu0 %328, %v139_v10   ;;  %v234_v15 = vld [vmem:[%s473_s5 + $0x8] sm:$0xff]  ;;  %v235_v16 = vld [vmem:[%s473_s5 + $0x10] sm:$0xff]  ;;  %v236_v17 = vld [vmem:[%s473_s5 + $0x18] sm:$0xff]  ;;  %v277_v4 = vshrl.u32 %v276_v1, 7 }
   0xf   :  { %150 = vperm.xlu1 %329, %v140_v11   ;;  %v270_v18 = vld [vmem:[#allocation2] sm:$0x1]  ;;  %v333_v38 = vld [vmem:[%s471_s3 + $0x8] sm:$0xff]  }
  0x10   :  { %v332_v19 = vld [vmem:[%s471_s3] sm:$0xff]   ;;  %v278_v7 = vsub.s32 0, %v277_v4  ;;  %s359_s3 = smov [#allocation3]  }
  0x11   :  { %321 = vmatprep.mubr.msk.bf16.mxu1 %vm173_vm2, %v332_v19  ;;  %s288_s8 = sshll.u32 %s359_s3, 4  ;;  %s289_s8 = int_to_ptr.vmem [resolvable:$true] %s288_s8 }
  0x12   :  { %155 = vperm.xlu0 %328, %v141_v12   ;;  %s334_s6 = scalar_lea.vmem %s289_s8, 16  ;;  %s338_s9 = scalar_lea.vmem %s289_s8, 32 }
  0x13   :  { %160 = vperm.xlu1 %329, %v142_v13   ;;  %p335_p0 = scmp.ne.s32.totalorder %s289_s8, %s334_s6  ;;  %p339_p1 = scmp.lt.s32.totalorder %s289_s8, %s289_s8 }
  0x14   :  { %p340_p2 = scmp.lt.s32.totalorder %s338_s9, %s334_s6 }
  0x16   :  { %239 = vperm.xlu0 %328, %v233_v14   ;;  %p341_p3 = por %p340_p2, %p339_p1 }
  0x17   :  { %244 = vperm.xlu1 %329, %v234_v15  }
  0x18   :  { %p342_p4 = pnand %p341_p3, %p335_p0 }
  0x1a   :  { %249 = vperm.xlu0 %328, %v235_v16  }
  0x1b   :  { %254 = vperm.xlu1 %329, %v236_v17  }
  0x1e   :  { %273 = vperm.xlu0 %328, %v270_v18  }
  0x85   :  { %v42_v21 = vpop.permute.xlu0 %41 }
  0x86   :  { %v52_v20 = vpop.permute.xlu1 %51 }
  0x89   :  { %v47_v28 = vpop.permute.xlu0 %46 }
  0x8a   :  { %v57_v25 = vpop.permute.xlu1 %56 }
  0x8d   :  { %v146_v39 = vpop.permute.xlu0 %145 }
  0x8e   :  { %v151_v40 = vpop.permute.xlu1 %150 }
  0x91   :  { %v156_v41 = vpop.permute.xlu0 %155 }
  0x92   :  { %v161_v42 = vpop.permute.xlu1 %160 }
  0x95   :  { %v240_v48 = vpop.permute.xlu0 %239 }
  0x96   :  { %v245_v53 = vpop.permute.xlu1 %244 }
  0x99   :  { %v250_v59 = vpop.permute.xlu0 %249 }
  0x9a   :  { %v255_v62 = vpop.permute.xlu1 %254 }
  0x9d   :  { %v274_v9 = vpop.permute.xlu0 %273 }
  0x9e   :  { %v279_v11 = vrot.slane %v274_v9, %v278_v7 }
  0xdb   :  { %v315_v22 = vpop.f32.mrb[0].mxu0 }
  0xdc   :  { %v123_v23 = vadd.f32 %v315_v22, %v52_v20  ;;  %v114_v24 = vpop.f32.mrb[1].mxu0 }
  0xdd   :  { %v115_v26 = vadd.f32 %v114_v24, %v42_v21  ;;  %v316_v27 = vpop.f32.mrb[2].mxu0 }
  0xde   :  { %v126_v29 = vadd.f32 %v316_v27, %v57_v25  ;;  %v117_v30 = vpop.f32.mrb[3].mxu0  ;;  %v131_v32 = vmax.f32 %v123_v23, 0.0 }
  0xdf   :  { %v118_v31 = vadd.f32 %v117_v30, %v47_v28  ;;  %v129_v34 = vmax.f32 %v115_v26, 0.0 }
  0xe0   :  { %v132_v33 = vmax.f32 %v126_v29, 0.0 }
  0xe1   :  { %v130_v35 = vmax.f32 %v118_v31, 0.0 }
  0xe2   :  { %v134_v36 = vpack.c.bf16 %v132_v33, %v131_v32 }
  0xe3   :  { %v133_v37 = vpack.c.bf16 %v130_v35, %v129_v34 }
  0xe5   :  { %317 = vmatprep.subr.bf16.mxu1 %v133_v37 }
  0xe6   :  { %318 = vmatpush3.bf16.msra.mxu1 %v133_v37 }
  0xe7   :  { %319 = vmatprep.subr.bf16.mxu1 %v134_v36 }
  0xea   :  { %320 = vmatpush3.bf16.msra.mxu1 %v134_v36 }
  0xed   :  { %322 = vmatmul.mubr.msk.bf16.vlgmr.msra.gmra.mrb[0].mxu1 %vm173_vm2, %v333_v38 }
 0x1c0   :  { %v323_v43 = vpop.f32.mrb[0].mxu1 }
 0x1c1   :  { %v214_v44 = vpop.f32.mrb[1].mxu1  ;;  %v223_v45 = vadd.f32 %v323_v43, %v156_v41 }
 0x1c2   :  { %v215_v46 = vadd.f32 %v214_v44, %v146_v39  ;;  %v324_v47 = vpop.f32.mrb[2].mxu1 }
 0x1c3   :  { %v217_v49 = vpop.f32.mrb[3].mxu1  ;;  %v226_v51 = vadd.f32 %v324_v47, %v161_v42  ;;  %v231_v54 = vmax.f32 %v223_v45, 0.0 }
 0x1c4   :  { %v229_v50 = vmax.f32 %v215_v46, 0.0  ;;  %v218_v52 = vadd.f32 %v217_v49, %v151_v40 }
 0x1c5   :  { %v232_v57 = vmax.f32 %v226_v51, 0.0  ;;  %v259_v60 = vmul.f32 %v250_v59, %v231_v54 }
 0x1c6   :  { %v230_v55 = vmax.f32 %v218_v52, 0.0  ;;  %v257_v56 = vmul.f32 %v240_v48, %v229_v50 }
 0x1c7   :  { %v260_v63 = vmul.f32 %v255_v62, %v232_v57 }
 0x1c8   :  { %v258_v58 = vmul.f32 %v245_v53, %v230_v55 }
 0x1ca   :  { %v261_v61 = vadd.f32 %v258_v58, %v257_v56 }
 0x1cc   :  { %v262_v0 = vadd.f32 %v261_v61, %v259_v60 }
 0x1ce   :  { %v263_v2 = vadd.f32 %v262_v0, %v260_v63 }
 0x1d0   :  { %v264_v3 = vrot.slane %v263_v2, 4 }
 0x1d2   :  { %v265_v5 = vadd.f32 %v264_v3, %v263_v2 }
 0x1d4   :  { %v266_v6 = vrot.slane %v265_v5, 2 }
 0x1d6   :  { %v267_v8 = vadd.f32 %v266_v6, %v265_v5 }
 0x1d8   :  { %v268_v10 = vrot.slane %v267_v8, 1 }
 0x1da   :  { %v269_v12 = vadd.f32 %v268_v10, %v267_v8 }
 0x1dc   :  { %v280_v13 = vadd.f32 %v279_v11, %v269_v12 }
 0x1de   :  { %281 = vst [vmem:[#allocation3] sm:$0x1] %v280_v13 }
 0x1df   :  { %345 = shalt.err (!%p342_p4)
}
 0x1e0   :  { %s346_s11 = scalar_lea.hbm %s475_s7, 16 }
 0x1e1   :  { %p347_p5 = scmp.ne.s32.totalorder %s475_s7, %s346_s11  ;;  %p350_p6 = scmp.lt.u32.totalorder %s346_s11, %s475_s7 }
 0x1e3   :  { %p352_p7 = pnand %p350_p6, %p347_p5 }
 0x1e5   :  { %355 = shalt.err (!%p352_p7)
}
 0x1e6   :  { %291 = dma.vmem_to_hbm [thread:$0]  %s289_s8, 16, %s475_s7, [#allocation4]  }
 0x1e7   :  { %356 = dma.done.wait [#allocation4], 16  }
 0x1e8   :  { %357 = vsyncadd [#allocation4], 4294967280 }
 0x1e9   :  { %295 = vsyncpa [#allocation4], 1 }

</bundles_post_ra>
